<compile_context>
chip_gen: v5e
topology: v5e:2x2
jax: 0.10.0
libtpu: 0.0.40
codegen_flags: <defaults>
</compile_context>

<pallas_src>
import jax
import jax.numpy as jnp
from jax.experimental import pallas as pl
from jax.experimental.pallas import tpu as pltpu


def _round_up(x, m):
    return ((x + m - 1) // m) * m


def _cdiv(a, b):
    return -(-a // b)


# --------------------------------------------------------------------------
# Fused kernel:
#   grid = (B_blocks, K_blocks)  with K (the flattened-feature reduction) last.
#   per step:  acc += x_tile(bf16) @ w_enc_tile(bf16)      (MXU, f32 accumulate)
#   at last K: h = relu(acc + b_enc)                       (f32, stays in VMEM)
#              out = h(bf16) @ w_heads_flat(bf16) + b_heads (all heads at once)
# --------------------------------------------------------------------------
def _fused_stylenet_kernel(x_ref, we_ref, be_ref, wh_ref, bh_ref, o_ref, acc_ref):
    k = pl.program_id(1)

    @pl.when(k == 0)
    def _():
        acc_ref[...] = jnp.zeros_like(acc_ref)

    acc_ref[...] += jnp.dot(
        x_ref[...], we_ref[...], preferred_element_type=jnp.float32
    )

    @pl.when(k == pl.num_programs(1) - 1)
    def _():
        h = jnp.maximum(acc_ref[...] + be_ref[...], 0.0)          # encoder ReLU (f32)
        out = jnp.dot(                                            # all heads: (tb,Dp)x(Dp,NSp)
            h.astype(jnp.bfloat16), wh_ref[...],
            preferred_element_type=jnp.float32,
        ) + bh_ref[...]
        o_ref[...] = out.astype(o_ref.dtype)


def prepare_stylenet_params(params):
    """One-time weight preparation (do this at param-init time, NOT per call):
    flatten the per-domain heads, transpose to (D, N*S), zero-pad to lane-dense
    slabs, and cast MXU operands to bf16 (biases stay f32)."""
    LANE = 128
    w_enc = params["w_enc"]                      # (F, D)
    b_enc = params["b_enc"]                      # (1, D)
    w_heads = params["w_heads"]                  # (N, S, D)
    b_heads = params["b_heads"]                  # (N, S)
    F, D = w_enc.shape
    N, S, _ = w_heads.shape
    NS = N * S

    # v6e/v7x MXUs are 2x256x256: once D is >=128 round it to 256-granularity.
    Dp = _round_up(D, 256) if D >= 128 else _round_up(D, LANE)
    NSp = _round_up(NS, LANE)                    # lane-dense head output width

    we_p = jnp.zeros((F, Dp), jnp.bfloat16).at[:, :D].set(w_enc.astype(jnp.bfloat16))
    be_p = jnp.zeros((1, Dp), jnp.float32).at[:, :D].set(
        b_enc.reshape(1, D).astype(jnp.float32))
    wh_flat = jnp.transpose(w_heads.reshape(NS, D))              # (D, N*S), once
    wh_p = jnp.zeros((Dp, NSp), jnp.bfloat16).at[:D, :NS].set(
        wh_flat.astype(jnp.bfloat16))
    bh_p = jnp.zeros((1, NSp), jnp.float32).at[:, :NS].set(
        b_heads.reshape(1, NS).astype(jnp.float32))

    return dict(we_p=we_p, be_p=be_p, wh_p=wh_p, bh_p=bh_p,
                F=F, D=D, N=N, S=S, NS=NS, Dp=Dp, NSp=NSp)


def stylenet_forward(x, y, prep, *, tb=None, tk=None):
    """x: (B, C, H, W) float32/bf16, y: (B,) int32 domain ids -> s: (B, style_dim)."""
    B = x.shape[0]
    # PyTorch `.view(B, -1)` flatten.  bf16 stream to the MXU; in production the
    # upstream AutoEncoder would emit bf16 directly, making this cast free.
    x_flat = x.reshape(B, -1).astype(jnp.bfloat16)
    F = x_flat.shape[1]
    assert F == prep["F"], (F, prep["F"])

    Dp, NSp, N, S, NS = prep["Dp"], prep["NSp"], prep["N"], prep["S"], prep["NS"]

    # ---- K tile: exact divisor of F (no zero-pad of x, only B may be ragged) --
    if tk is None:
        if F % 128 == 0:
            tk = 128
            for cand in range(min(F, 2048), 127, -128):   # largest 128-multiple divisor
                if F % cand == 0:
                    tk = cand
                    break
        else:
            # Rare: F not lane-aligned -> single full-extent K block (allowed
            # because the block dim equals the full array dim).
            tk = F

    # ---- B tile: no rounding B up to a full big tile; >=2 blocks when B>16 so
    #      both v7x TensorCores get work on the "parallel" axis ---------------
    if tb is None:
        if B <= 16:
            tb = 16                                   # one ragged block
        else:
            n_blk = max(2, _cdiv(B, 512))
            tb = min(512, _round_up(_cdiv(B, n_blk), 16))

    grid = (_cdiv(B, tb), F // tk)

    # ---- VMEM budget: count the 2x double-buffer for EVERY in/out spec
    #      (Pallas double-buffers constant-index specs too) + f32 accumulator.
    bf, f4 = 2, 4
    vmem_need = (
        2 * tb * tk * bf          # x tile
        + 2 * tk * Dp * bf        # w_enc tile
        + 2 * 1 * Dp * f4         # b_enc (resident but still 2-buffered)
        + 2 * Dp * NSp * bf       # all head weights (resident, 2-buffered)
        + 2 * 1 * NSp * f4        # all head biases
        + 2 * tb * NSp * f4       # output tile
        + tb * Dp * f4            # h accumulator scratch
    ) + (2 << 20)                 # compiler scratch / semaphore headroom
    try:
        vmem_cap = int(pltpu.get_tpu_info().vmem_capacity_bytes)
    except Exception:             # pragma: no cover - conservative fallback
        vmem_cap = 64 << 20       # v7x per-TensorCore VMEM
    vmem_limit = int(min(max(vmem_need, 16 << 20), int(0.75 * vmem_cap)))

    out_p = pl.pallas_call(
        _fused_stylenet_kernel,
        out_shape=jax.ShapeDtypeStruct((B, NSp), jnp.float32),
        grid=grid,
        in_specs=[
            pl.BlockSpec((tb, tk), lambda i, k: (i, k)),     # x tile (bf16)
            pl.BlockSpec((tk, Dp), lambda i, k: (k, 0)),     # w_enc tile (bf16)
            pl.BlockSpec((1, Dp), lambda i, k: (0, 0)),      # b_enc (resident)
            pl.BlockSpec((Dp, NSp), lambda i, k: (0, 0)),    # all head weights (resident)
            pl.BlockSpec((1, NSp), lambda i, k: (0, 0)),     # all head biases (resident)
        ],
        out_specs=pl.BlockSpec((tb, NSp), lambda i, k: (i, 0)),
        scratch_shapes=[pltpu.VMEM((tb, Dp), jnp.float32)],  # h accumulator, never hits HBM
        compiler_params=pltpu.CompilerParams(
            dimension_semantics=("parallel", "arbitrary"),   # B parallel (v7x 2 TCs), K reduction
            vmem_limit_bytes=vmem_limit,
        ),
    )(x_flat, prep["we_p"], prep["be_p"], prep["wh_p"], prep["bh_p"])

    # Drop lane padding, then the tiny per-sample domain gather in the wrapper.
    out_all = out_p[:, :NS].reshape(B, N, S)
    # NOTE: clamping is intentional bounds-safety; PyTorch indexing would raise
    # on out-of-range domain ids instead.
    y_safe = jnp.clip(y.astype(jnp.int32), 0, N - 1)
    s = out_all[jnp.arange(B), y_safe]
    return s


if __name__ == "__main__":
    # small config implied by the module: opt.ae_dim_out, opt.style_dim, opt.num_domains
    B, C, H, W = 2, 4, 16, 16
    ae_dim_out, style_dim, num_domains = 32, 8, 3

    key = jax.random.PRNGKey(0)
    k_x, k_we, k_be, k_wh, k_bh = jax.random.split(key, 5)

    x = jax.random.normal(k_x, (B, C, H, W), dtype=jnp.float32)
    y = jnp.array([1, 2], dtype=jnp.int32)                     # domain id per sample

    F = C * H * W
    params = {
        # encoder stand-in (see TODO(synk) above)
        "w_enc": (jax.random.normal(k_we, (F, ae_dim_out), jnp.float32) * 0.02),
        "b_enc": (jax.random.normal(k_be, (1, ae_dim_out), jnp.float32) * 0.02),
        # nn.ModuleList of num_domains x nn.Linear(ae_dim_out, style_dim)
        "w_heads": (jax.random.normal(k_wh, (num_domains, style_dim, ae_dim_out),
                                      jnp.float32) * 0.1),
        "b_heads": (jax.random.normal(k_bh, (num_domains, style_dim),
                                      jnp.float32) * 0.1),
    }

    prep = prepare_stylenet_params(params)        # once, at init time
    s = jax.block_until_ready(stylenet_forward(x, y, prep))

    # plain-JAX f32 reference (mirrors the PyTorch forward: all heads, stack, gather)
    h_ref = jnp.maximum(x.reshape(B, -1) @ params["w_enc"] + params["b_enc"], 0.0)
    out_all = jnp.einsum("bd,nsd->bns", h_ref, params["w_heads"]) + params["b_heads"][None]
    s_ref = out_all[jnp.arange(B), y]

    assert s.shape == (B, style_dim), s.shape
    # bf16 MXU inputs with f32 accumulation -> ~0.5-1% relative error vs f32 ref
    assert jnp.allclose(s, s_ref, atol=2e-2, rtol=2e-2), float(jnp.abs(s - s_ref).max())
    print("KERNEL_OK")
</pallas_src>

<mosaic_0001>
module attributes {stable_mosaic.version = 11 : i64} {
  func.func @_fused_stylenet_kernel(%arg0: i32, %arg1: i32, %arg2: memref<16x1024xbf16, #tpu.memory_space<vmem>>, %arg3: memref<1024x128xbf16, #tpu.memory_space<vmem>>, %arg4: memref<1x128xf32, #tpu.memory_space<vmem>>, %arg5: memref<128x128xbf16, #tpu.memory_space<vmem>>, %arg6: memref<1x128xf32, #tpu.memory_space<vmem>>, %arg7: memref<16x128xf32, #tpu.memory_space<vmem>>, %arg8: memref<16x128xf32, #tpu.memory_space<vmem>>) attributes {dimension_semantics = [#tpu.dimension_semantics<parallel>, #tpu.dimension_semantics<arbitrary>], iteration_bounds = array<i64: 1, 1>, scalar_prefetch = 0 : i64, scratch_operands = 1 : i64, tpu.core_type = #tpu.core_type<tc>, window_params = [{transform_indices = @transform_0, window_bounds = array<i64: 16, 1024>}, {transform_indices = @transform_1, window_bounds = array<i64: 1024, 128>}, {pipeline_mode = #tpu.pipeline_mode<synchronous>, transform_indices = @transform_2, window_bounds = array<i64: 1, 128>}, {pipeline_mode = #tpu.pipeline_mode<synchronous>, transform_indices = @transform_3, window_bounds = array<i64: 128, 128>}, {pipeline_mode = #tpu.pipeline_mode<synchronous>, transform_indices = @transform_4, window_bounds = array<i64: 1, 128>}, {transform_indices = @transform_5, window_bounds = array<i64: 16, 128>}]} {
    %c0_i32 = arith.constant 0 : i32
    %0 = arith.cmpi eq, %arg1, %c0_i32 : i32
    %1 = arith.extui %0 : i1 to i32
    %c0_i32_0 = arith.constant 0 : i32
    %2 = arith.cmpi ne, %1, %c0_i32_0 : i32
    scf.if %2 {
      %cst_10 = arith.constant 0.000000e+00 : f32
      %12 = vector.broadcast %cst_10 : f32 to vector<16x128xf32>
      %c0_11 = arith.constant 0 : index
      %c0_12 = arith.constant 0 : index
      %13 = vector.load %arg8[%c0_11, %c0_12] : memref<16x128xf32, #tpu.memory_space<vmem>>, vector<16x128xf32>
      tpu.vector_store %arg8[%c0_11, %c0_12], %12 {strides = array<i32>} : memref<16x128xf32, #tpu.memory_space<vmem>>, vector<16x128xf32>,
    } else {
    }
    %c0 = arith.constant 0 : index
    %c0_1 = arith.constant 0 : index
    %3 = vector.load %arg8[%c0, %c0_1] : memref<16x128xf32, #tpu.memory_space<vmem>>, vector<16x128xf32>
    %c0_2 = arith.constant 0 : index
    %c0_3 = arith.constant 0 : index
    %4 = vector.load %arg2[%c0_2, %c0_3] : memref<16x1024xbf16, #tpu.memory_space<vmem>>, vector<16x1024xbf16>
    %c0_4 = arith.constant 0 : index
    %c0_5 = arith.constant 0 : index
    %5 = vector.load %arg3[%c0_4, %c0_5] : memref<1024x128xbf16, #tpu.memory_space<vmem>>, vector<1024x128xbf16>
    %cst = arith.constant dense<0.000000e+00> : vector<16x128xf32>
    %6 = tpu.matmul %4, %5, %cst {dimension_numbers = #tpu.dot_dimension_numbers<[1], [0], [0], [1], [0, 0, 1, 1], [], []>} : vector<16x1024xbf16>, vector<1024x128xbf16>, vector<16x128xf32> -> vector<16x128xf32>
    %7 = arith.addf %3, %6 : vector<16x128xf32>
    %c0_6 = arith.constant 0 : index
    %c0_7 = arith.constant 0 : index
    %8 = vector.load %arg8[%c0_6, %c0_7] : memref<16x128xf32, #tpu.memory_space<vmem>>, vector<16x128xf32>
    tpu.vector_store %arg8[%c0_6, %c0_7], %7 {strides = array<i32>} : memref<16x128xf32, #tpu.memory_space<vmem>>, vector<16x128xf32>,
    %c0_i32_8 = arith.constant 0 : i32
    %9 = arith.cmpi eq, %arg1, %c0_i32_8 : i32
    %10 = arith.extui %9 : i1 to i32
    %c0_i32_9 = arith.constant 0 : i32
    %11 = arith.cmpi ne, %10, %c0_i32_9 : i32
    scf.if %11 {
      %c0_10 = arith.constant 0 : index
      %c0_11 = arith.constant 0 : index
      %12 = vector.load %arg8[%c0_10, %c0_11] : memref<16x128xf32, #tpu.memory_space<vmem>>, vector<16x128xf32>
      %c0_12 = arith.constant 0 : index
      %c0_13 = arith.constant 0 : index
      %13 = vector.load %arg4[%c0_12, %c0_13] : memref<1x128xf32, #tpu.memory_space<vmem>>, vector<1x128xf32>
      %14 = vector.broadcast %13 : vector<1x128xf32> to vector<16x128xf32>
      %15 = arith.addf %12, %14 : vector<16x128xf32>
      %cst_14 = arith.constant 0.000000e+00 : f32
      %16 = vector.broadcast %cst_14 : f32 to vector<16x128xf32>
      %17 = arith.maximumf %15, %16 : vector<16x128xf32>
      %18 = arith.truncf %17 : vector<16x128xf32> to vector<16x128xbf16>
      %c0_15 = arith.constant 0 : index
      %c0_16 = arith.constant 0 : index
      %19 = vector.load %arg5[%c0_15, %c0_16] : memref<128x128xbf16, #tpu.memory_space<vmem>>, vector<128x128xbf16>
      %cst_17 = arith.constant dense<0.000000e+00> : vector<16x128xf32>
      %20 = tpu.matmul %18, %19, %cst_17 {dimension_numbers = #tpu.dot_dimension_numbers<[1], [0], [0], [1], [0, 0, 1, 1], [], []>} : vector<16x128xbf16>, vector<128x128xbf16>, vector<16x128xf32> -> vector<16x128xf32>
      %c0_18 = arith.constant 0 : index
      %c0_19 = arith.constant 0 : index
      %21 = vector.load %arg6[%c0_18, %c0_19] : memref<1x128xf32, #tpu.memory_space<vmem>>, vector<1x128xf32>
      %22 = vector.broadcast %21 : vector<1x128xf32> to vector<16x128xf32>
      %23 = arith.addf %20, %22 : vector<16x128xf32>
      %c0_20 = arith.constant 0 : index
      %c0_21 = arith.constant 0 : index
      %24 = vector.load %arg7[%c0_20, %c0_21] : memref<16x128xf32, #tpu.memory_space<vmem>>, vector<16x128xf32>
      tpu.vector_store %arg7[%c0_20, %c0_21], %23 {strides = array<i32>} : memref<16x128xf32, #tpu.memory_space<vmem>>, vector<16x128xf32>,
    } else {
    }
    return
  }
  func.func @transform_0(%arg0: i32, %arg1: i32) -> (i32, i32) {
    %c0_i32 = arith.constant 0 : i32
    return %arg0, %arg1 : i32, i32
  }
  func.func @transform_1(%arg0: i32, %arg1: i32) -> (i32, i32) {
    %c0_i32 = arith.constant 0 : i32
    %c0_i32_0 = arith.constant 0 : i32
    return %arg1, %c0_i32 : i32, i32
  }
  func.func @transform_2(%arg0: i32, %arg1: i32) -> (i32, i32) {
    %c0_i32 = arith.constant 0 : i32
    %c0_i32_0 = arith.constant 0 : i32
    %c0_i32_1 = arith.constant 0 : i32
    return %c0_i32, %c0_i32_0 : i32, i32
  }
  func.func @transform_3(%arg0: i32, %arg1: i32) -> (i32, i32) {
    %c0_i32 = arith.constant 0 : i32
    %c0_i32_0 = arith.constant 0 : i32
    %c0_i32_1 = arith.constant 0 : i32
    return %c0_i32, %c0_i32_0 : i32, i32
  }
  func.func @transform_4(%arg0: i32, %arg1: i32) -> (i32, i32) {
    %c0_i32 = arith.constant 0 : i32
    %c0_i32_0 = arith.constant 0 : i32
    %c0_i32_1 = arith.constant 0 : i32
    return %c0_i32, %c0_i32_0 : i32, i32
  }
  func.func @transform_5(%arg0: i32, %arg1: i32) -> (i32, i32) {
    %c0_i32 = arith.constant 0 : i32
    %c0_i32_0 = arith.constant 0 : i32
    return %arg0, %c0_i32 : i32, i32
  }
}

</mosaic_0001>

<bundles_post_ra>
// kernel: tpu_custom_call.1
= control target key start
LH: loop header
LB: loop body
LE: loop exit
PB: predicated region body
PF: predicated region fallthrough
CT: control target
= control target key end

     0   :  { %10 = vsyncpa [#allocation4], 0  ;;  %s1401_s0 = inlined_call_operand.hbm [shape: bf16[2,1024], index: 0, kind: input, shape index: {}]   ;;  %s1402_s1 = inlined_call_operand.hbm [shape: bf16[1024,128], index: 1, kind: input, shape index: {}]   ;;  %s1403_s2 = inlined_call_operand.vmem [shape: f32[1,128], index: 2, kind: input, shape index: {}]   ;;  %s1404_s3 = inlined_call_operand.hbm [shape: bf16[128,128], index: 3, kind: input, shape index: {}]   ;;  %s1405_s4 = inlined_call_operand.vmem [shape: f32[1,128], index: 4, kind: input, shape index: {}]   ;;  %s1406_s5 = inlined_call_operand.hbm [shape: f32[2,128], index: 5, kind: output, shape index: {}]  }
   0x1   :  { %11 = vsyncpa [#allocation7], 0 }
   0x2   :  { %12 = vsyncpa [#allocation5], 0  ;;  %s30_s20 = sshll.u32 %s1402_s1, 4  ;;  %s31_s20 = int_to_ptr.hbm [resolvable:$true] %s30_s20 }
   0x3   :  { %16 = vsyncadd [#allocation4], 896  ;;  %s1343_s21 = smov [#allocation6]   ;;  %s17_s25 = sshll.u32 %s1401_s0, 4  ;;  %s18_s25 = int_to_ptr.hbm [resolvable:$true] %s17_s25 }
   0x4   :  { %s32_s22 = sshll.u32 %s1343_s21, 4  ;;  %s1344_s26 = smov 64   ;;  %s33_s22 = int_to_ptr.vmem [resolvable:$true] %s32_s22 }
   0x5   :  { %s1345_s27 = smov 4   ;;  %s1346_s28 = smov [#allocation3]  }
   0x6   :  { %38 = dma.hbm_to_vmem [thread:$0]  %s31_s20, 8192, %s33_s22, [#allocation7], %s1344_s26, %s1344_s26, %s1345_s27  }
   0x7   :  { %s19_s29 = sshll.u32 %s1346_s28, 4  ;;  %s1347_s30 = smov 128   ;;  %s20_s29 = int_to_ptr.vmem [resolvable:$true] %s19_s29 }
   0x8   :  { %s1348_s6 = smov 8   ;;  %s45_s8 = sshll.u32 %s1404_s3, 4  ;;  %s46_s8 = int_to_ptr.hbm [resolvable:$true] %s45_s8 }
   0x9   :  { %25 = dma.hbm_to_vmem [thread:$0]  %s18_s25, 128, %s20_s29, [#allocation4], %s1347_s30, %s1347_s30, %s1348_s6  }
   0xa   :  { %s1349_s9 = smov [#allocation8]  }
   0xb   :  { %s47_s10 = sshll.u32 %s1349_s9, 4  ;;  %s48_s10 = int_to_ptr.vmem [resolvable:$true] %s47_s10 }
   0xc   :  { %53 = dma.hbm_to_vmem [thread:$0]  %s46_s8, 1024, %s48_s10, [#allocation7], %s1344_s26, %s1344_s26, %s1345_s27  }
   0xd   :  { %1337 = dma.done.wait [#allocation4], 1024  }
   0xe   :  { %1338 = vsyncadd [#allocation4], 4294966272 }
   0xf   :  { %1339 = dma.done.wait [#allocation7], 9216  }
  0x10   :  { %1340 = vsyncadd [#allocation7], 4294958080  ;;  %v1164_v0 = vld [vmem:[#allocation6 + $0x38] sm:$0xff]  ;;  %v1163_v4 = vld [vmem:[#allocation6 + $0x30] sm:$0xff] }
  0x11   :  { %v1172_v1 = vld [vmem:[#allocation6 + $0x78] sm:$0xff]  ;;  %635 = vmatpush.bf16.msra.mxu0 %v1164_v0  ;;  %v1171_v5 = vld [vmem:[#allocation6 + $0x70] sm:$0xff]  ;;  %v1162_v8 = vld [vmem:[#allocation6 + $0x28] sm:$0xff] }
  0x12   :  { %v1180_v2 = vld [vmem:[#allocation6 + $0xb8] sm:$0xff]  ;;  %649 = vmatpush.bf16.msra.mxu1 %v1172_v1  ;;  %v1179_v6 = vld [vmem:[#allocation6 + $0xb0] sm:$0xff]  ;;  %v1170_v9 = vld [vmem:[#allocation6 + $0x68] sm:$0xff] }
  0x13   :  { %v1188_v3 = vld [vmem:[#allocation6 + $0xf8] sm:$0xff]  ;;  %663 = vmatpush.bf16.msra.mxu2 %v1180_v2  ;;  %v1187_v7 = vld [vmem:[#allocation6 + $0xf0] sm:$0xff]  ;;  %v1178_v10 = vld [vmem:[#allocation6 + $0xa8] sm:$0xff] }
  0x14   :  { %677 = vmatpush.bf16.msra.mxu3 %v1188_v3  ;;  %v1186_v11 = vld [vmem:[#allocation6 + $0xe8] sm:$0xff]  ;;  %v1161_v12 = vld [vmem:[#allocation6 + $0x20] sm:$0xff]  ;;  %v1160_v16 = vld [vmem:[#allocation6 + $0x18] sm:$0xff] }
  0x15   :  { %636 = vmatpush.bf16.msra.mxu0 %v1163_v4  ;;  %v1169_v13 = vld [vmem:[#allocation6 + $0x60] sm:$0xff]  ;;  %v77_v18 = vld [vmem:[#allocation3 + $0x8] sm:$0xff]  ;;  %v1168_v19 = vld [vmem:[#allocation6 + $0x58] sm:$0xff] }
  0x16   :  { %650 = vmatpush.bf16.msra.mxu1 %v1171_v5  ;;  %v1177_v14 = vld [vmem:[#allocation6 + $0xa0] sm:$0xff]  ;;  %v78_v20 = vld [vmem:[#allocation3 + $0x10] sm:$0xff]  ;;  %v79_v21 = vld [vmem:[#allocation3 + $0x18] sm:$0xff]  ;;  %216 = vst [vmem:[#allocation1 + $0x1] ss:$9 sm:$0xff] %v77_v18 }
  0x17   :  { %664 = vmatpush.bf16.msra.mxu2 %v1179_v6  ;;  %v1185_v15 = vld [vmem:[#allocation6 + $0xe0] sm:$0xff]  ;;  %v1176_v22 = vld [vmem:[#allocation6 + $0x98] sm:$0xff]  ;;  %v81_v25 = vld [vmem:[#allocation3 + $0x28] sm:$0xff]  ;;  %219 = vst [vmem:[#allocation1 + $0x2] ss:$9 sm:$0xff] %v78_v20 }
  0x18   :  { %678 = vmatpush.bf16.msra.mxu3 %v1187_v7  ;;  %v76_v17 = vld [vmem:[#allocation3] sm:$0xff]  ;;  %v1184_v23 = vld [vmem:[#allocation6 + $0xd8] sm:$0xff]  ;;  %v82_v26 = vld [vmem:[#allocation3 + $0x30] sm:$0xff]  ;;  %222 = vst [vmem:[#allocation1 + $0x3] ss:$9 sm:$0xff] %v79_v21 }
  0x19   :  { %637 = vmatpush.bf16.msra.mxu0 %v1162_v8  ;;  %213 = vst [vmem:[#allocation1] ss:$9 sm:$0xff] %v76_v17  ;;  %v80_v24 = vld [vmem:[#allocation3 + $0x20] sm:$0xff]  ;;  %v1159_v27 = vld [vmem:[#allocation6 + $0x10] sm:$0xff]  ;;  %v83_v29 = vld [vmem:[#allocation3 + $0x38] sm:$0xff] }
  0x1a   :  { %651 = vmatpush.bf16.msra.mxu1 %v1170_v9  ;;  %v1167_v28 = vld [vmem:[#allocation6 + $0x50] sm:$0xff]  ;;  %225 = vst [vmem:[#allocation1 + $0x4] ss:$9 sm:$0xff] %v80_v24  ;;  %v1158_v32 = vld [vmem:[#allocation6 + $0x8] sm:$0xff]  ;;  %v1157_v36 = vld [vmem:[#allocation6] sm:$0xff] }
  0x1b   :  { %665 = vmatpush.bf16.msra.mxu2 %v1178_v10  ;;  %v1175_v30 = vld [vmem:[#allocation6 + $0x90] sm:$0xff]  ;;  %228 = vst [vmem:[#allocation1 + $0x5] ss:$9 sm:$0xff] %v81_v25  ;;  %v1166_v33 = vld [vmem:[#allocation6 + $0x48] sm:$0xff]  ;;  %v1165_v37 = vld [vmem:[#allocation6 + $0x40] sm:$0xff] }
  0x1c   :  { %679 = vmatpush.bf16.msra.mxu3 %v1186_v11  ;;  %v1183_v31 = vld [vmem:[#allocation6 + $0xd0] sm:$0xff]  ;;  %231 = vst [vmem:[#allocation1 + $0x6] ss:$9 sm:$0xff] %v82_v26  ;;  %v1174_v34 = vld [vmem:[#allocation6 + $0x88] sm:$0xff]  ;;  %v1173_v38 = vld [vmem:[#allocation6 + $0x80] sm:$0xff] }
  0x1d   :  { %638 = vmatpush.bf16.msra.mxu0 %v1161_v12  ;;  %234 = vst [vmem:[#allocation1 + $0x7] ss:$9 sm:$0xff] %v83_v29  ;;  %v1182_v35 = vld [vmem:[#allocation6 + $0xc8] sm:$0xff]  ;;  %v1181_v39 = vld [vmem:[#allocation6 + $0xc0] sm:$0xff]  ;;  %v1196_v40 = vld [vmem:[#allocation6 + $0x138] sm:$0xff] }
  0x1e   :  { %652 = vmatpush.bf16.msra.mxu1 %v1169_v13  ;;  %v1204_v41 = vld [vmem:[#allocation6 + $0x178] sm:$0xff]  ;;  %v1195_v44 = vld [vmem:[#allocation6 + $0x130] sm:$0xff]  ;;  %v1194_v52 = vld [vmem:[#allocation6 + $0x128] sm:$0xff] }
  0x1f   :  { %666 = vmatpush.bf16.msra.mxu2 %v1177_v14  ;;  %v1212_v42 = vld [vmem:[#allocation6 + $0x1b8] sm:$0xff]  ;;  %v1203_v47 = vld [vmem:[#allocation6 + $0x170] sm:$0xff]  ;;  %v1202_v53 = vld [vmem:[#allocation6 + $0x168] sm:$0xff] }
  0x20   :  { %680 = vmatpush.bf16.msra.mxu3 %v1185_v15  ;;  %v1220_v43 = vld [vmem:[#allocation6 + $0x1f8] sm:$0xff]  ;;  %v1211_v50 = vld [vmem:[#allocation6 + $0x1b0] sm:$0xff]  ;;  %v1210_v54 = vld [vmem:[#allocation6 + $0x1a8] sm:$0xff] }
  0x21   :  { %639 = vmatpush.bf16.msra.mxu0 %v1160_v16  ;;  %v1219_v51 = vld [vmem:[#allocation6 + $0x1f0] sm:$0xff]  ;;  %v1218_v55 = vld [vmem:[#allocation6 + $0x1e8] sm:$0xff]  ;;  %v1193_v56 = vld [vmem:[#allocation6 + $0x120] sm:$0xff] }
  0x22   :  { %653 = vmatpush.bf16.msra.mxu1 %v1168_v19  ;;  %v1201_v57 = vld [vmem:[#allocation6 + $0x160] sm:$0xff]  ;;  %v1192_v60 = vld [vmem:[#allocation6 + $0x118] sm:$0xff]  ;;  %v1191_v0 = vld [vmem:[#allocation6 + $0x110] sm:$0xff] }
  0x23   :  { %667 = vmatpush.bf16.msra.mxu2 %v1176_v22  ;;  %v1209_v58 = vld [vmem:[#allocation6 + $0x1a0] sm:$0xff]  ;;  %v1200_v61 = vld [vmem:[#allocation6 + $0x158] sm:$0xff]  ;;  %v1199_v1 = vld [vmem:[#allocation6 + $0x150] sm:$0xff] }
  0x24   :  { %681 = vmatpush.bf16.msra.mxu3 %v1184_v23  ;;  %v237_v45 = vld [vmem:[#allocation1 + $0x12] sm:$0xff]  ;;  %v238_v46 = vld [vmem:[#allocation1 + $0x1b] sm:$0xff]  ;;  %v236_v49 = vld [vmem:[#allocation1 + $0x9] sm:$0xff] }
  0x25   :  { %640 = vmatpush.bf16.msra.mxu0 %v1159_v27  ;;  %v235_v48 = vld [vmem:[#allocation1] sm:$0xff]  ;;  %v1217_v59 = vld [vmem:[#allocation6 + $0x1e0] sm:$0xff]  ;;  %v1207_v2 = vld [vmem:[#allocation6 + $0x190] sm:$0xff] }
  0x26   :  { %654 = vmatpush.bf16.msra.mxu1 %v1167_v28  ;;  %v1208_v62 = vld [vmem:[#allocation6 + $0x198] sm:$0xff]  ;;  %v1215_v3 = vld [vmem:[#allocation6 + $0x1d0] sm:$0xff]  ;;  %v1190_v4 = vld [vmem:[#allocation6 + $0x108] sm:$0xff] }
  0x27   :  { %668 = vmatpush.bf16.msra.mxu2 %v1175_v30  ;;  %v1216_v63 = vld [vmem:[#allocation6 + $0x1d8] sm:$0xff]  ;;  %v1198_v5 = vld [vmem:[#allocation6 + $0x148] sm:$0xff]  ;;  %v1189_v8 = vld [vmem:[#allocation6 + $0x100] sm:$0xff] }
  0x28   :  { %682 = vmatpush.bf16.msra.mxu3 %v1183_v31  ;;  %v1206_v6 = vld [vmem:[#allocation6 + $0x188] sm:$0xff]  ;;  %v1197_v9 = vld [vmem:[#allocation6 + $0x140] sm:$0xff]  ;;  %v242_v15 = vld [vmem:[#allocation1 + $0x3f] sm:$0xff] }
  0x29   :  { %641 = vmatpush.bf16.msra.mxu0 %v1158_v32  ;;  %v1214_v7 = vld [vmem:[#allocation6 + $0x1c8] sm:$0xff]  ;;  %v1205_v10 = vld [vmem:[#allocation6 + $0x180] sm:$0xff]  ;;  %v1228_v16 = vld [vmem:[#allocation8 + $0x38] sm:$0xff] }
  0x2a   :  { %655 = vmatpush.bf16.msra.mxu1 %v1166_v33  ;;  %v1213_v11 = vld [vmem:[#allocation6 + $0x1c0] sm:$0xff]  ;;  %v241_v14 = vld [vmem:[#allocation1 + $0x36] sm:$0xff]  ;;  %v1224_v20 = vld [vmem:[#allocation8 + $0x18] sm:$0xff] }
  0x2b   :  { %669 = vmatpush.bf16.msra.mxu2 %v1174_v34  ;;  %v239_v12 = vld [vmem:[#allocation1 + $0x24] sm:$0xff]  ;;  %v240_v13 = vld [vmem:[#allocation1 + $0x2d] sm:$0xff]  ;;  %v1227_v17 = vld [vmem:[#allocation8 + $0x30] sm:$0xff] }
  0x2c   :  { %683 = vmatpush.bf16.msra.mxu3 %v1182_v35  ;;  %v1226_v18 = vld [vmem:[#allocation8 + $0x28] sm:$0xff]  ;;  %v1225_v19 = vld [vmem:[#allocation8 + $0x20] sm:$0xff]  ;;  %v1223_v21 = vld [vmem:[#allocation8 + $0x10] sm:$0xff] }
  0x2d   :  { %642 = vmatpush.bf16.msra.mxu0 %v1157_v36  ;;  %v1222_v24 = vld [vmem:[#allocation8 + $0x8] sm:$0xff]  ;;  %v1221_v27 = vld [vmem:[#allocation8] sm:$0xff] }
  0x2e   :  { %656 = vmatpush.bf16.msra.mxu1 %v1165_v37 }
  0x2f   :  { %670 = vmatpush.bf16.msra.mxu2 %v1173_v38 }
  0x30   :  { %684 = vmatpush.bf16.msra.mxu3 %v1181_v39  ;;  %643 = vmatmul.bf16.vlgmr.msra.gmra.mxu0 %v235_v48 }
  0x31   :  { %691 = vmatpush.bf16.msrb.mxu0 %v1196_v40  ;;  %657 = vmatmul.bf16.vlgmr.msra.gmra.mxu1 %v236_v49  ;;  %v1239_v49 = vld [vmem:[%s1403_s2] ss:$0 sm:$0xff] }
  0x32   :  { %705 = vmatpush.bf16.msrb.mxu1 %v1204_v41  ;;  %671 = vmatmul.bf16.vlgmr.msra.gmra.mxu2 %v237_v45 }
  0x33   :  { %719 = vmatpush.bf16.msrb.mxu2 %v1212_v42  ;;  %685 = vmatmul.bf16.vlgmr.msra.gmra.mxu3 %v238_v46 }
  0x34   :  { %733 = vmatpush.bf16.msrb.mxu3 %v1220_v43 }
  0x35   :  { %692 = vmatpush.bf16.msrb.mxu0 %v1195_v44 }
  0x36   :  { %706 = vmatpush.bf16.msrb.mxu1 %v1203_v47 }
  0x37   :  { %720 = vmatpush.bf16.msrb.mxu2 %v1211_v50 }
  0x38   :  { %734 = vmatpush.bf16.msrb.mxu3 %v1219_v51 }
  0x39   :  { %693 = vmatpush.bf16.msrb.mxu0 %v1194_v52 }
  0x3a   :  { %707 = vmatpush.bf16.msrb.mxu1 %v1202_v53 }
  0x3b   :  { %721 = vmatpush.bf16.msrb.mxu2 %v1210_v54 }
  0x3c   :  { %735 = vmatpush.bf16.msrb.mxu3 %v1218_v55 }
  0x3d   :  { %694 = vmatpush.bf16.msrb.mxu0 %v1193_v56 }
  0x3e   :  { %708 = vmatpush.bf16.msrb.mxu1 %v1201_v57 }
  0x3f   :  { %722 = vmatpush.bf16.msrb.mxu2 %v1209_v58 }
  0x40   :  { %736 = vmatpush.bf16.msrb.mxu3 %v1217_v59 }
  0x41   :  { %695 = vmatpush.bf16.msrb.mxu0 %v1192_v60  ;;  %v1240_v60 = vld [vmem:[%s1405_s4] ss:$0 sm:$0xff] }
  0x42   :  { %709 = vmatpush.bf16.msrb.mxu1 %v1200_v61 }
  0x43   :  { %723 = vmatpush.bf16.msrb.mxu2 %v1208_v62 }
  0x44   :  { %737 = vmatpush.bf16.msrb.mxu3 %v1216_v63 }
  0x45   :  { %696 = vmatpush.bf16.msrb.mxu0 %v1191_v0 }
  0x46   :  { %710 = vmatpush.bf16.msrb.mxu1 %v1199_v1 }
  0x47   :  { %724 = vmatpush.bf16.msrb.mxu2 %v1207_v2 }
  0x48   :  { %738 = vmatpush.bf16.msrb.mxu3 %v1215_v3 }
  0x49   :  { %697 = vmatpush.bf16.msrb.mxu0 %v1190_v4 }
  0x4a   :  { %711 = vmatpush.bf16.msrb.mxu1 %v1198_v5 }
  0x4b   :  { %725 = vmatpush.bf16.msrb.mxu2 %v1206_v6 }
  0x4c   :  { %739 = vmatpush.bf16.msrb.mxu3 %v1214_v7 }
  0x4d   :  { %698 = vmatpush.bf16.msrb.mxu0 %v1189_v8 }
  0x4e   :  { %712 = vmatpush.bf16.msrb.mxu1 %v1197_v9 }
  0x4f   :  { %726 = vmatpush.bf16.msrb.mxu2 %v1205_v10 }
  0x50   :  { %740 = vmatpush.bf16.msrb.mxu3 %v1213_v11  ;;  %699 = vmatmul.bf16.vlgmr.msrb.gmra.mxu0 %v239_v12 }
  0x51   :  { %713 = vmatmul.bf16.vlgmr.msrb.gmra.mxu1 %v240_v13  ;;  %833 = vmatpush.bf16.msra.mxu0 %v1228_v16 }
  0x52   :  { %727 = vmatmul.bf16.vlgmr.msrb.gmra.mxu2 %v241_v14 }
  0x53   :  { %741 = vmatmul.bf16.vlgmr.msrb.gmra.mxu3 %v242_v15 }
  0x55   :  { %834 = vmatpush.bf16.msra.mxu0 %v1227_v17 }
  0x59   :  { %835 = vmatpush.bf16.msra.mxu0 %v1226_v18 }
  0x5d   :  { %836 = vmatpush.bf16.msra.mxu0 %v1225_v19 }
  0x61   :  { %837 = vmatpush.bf16.msra.mxu0 %v1224_v20 }
  0x65   :  { %838 = vmatpush.bf16.msra.mxu0 %v1223_v21 }
  0x69   :  { %839 = vmatpush.bf16.msra.mxu0 %v1222_v24 }
  0x6d   :  { %840 = vmatpush.bf16.msra.mxu0 %v1221_v27 }
  0xad   :  { %v644_v22 = vpop.f32.mrf.mxu0 }
  0xae   :  { %v658_v23 = vpop.f32.mrf.mxu1 }
  0xaf   :  { %v659_v29 = vadd.f32 %v658_v23, %v644_v22 }
  0xb5   :  { %v672_v25 = vpop.f32.mrf.mxu2  ;;  %v646_v28 = vpop.f32.mrf.mxu0 }
  0xb6   :  { %v686_v26 = vpop.f32.mrf.mxu3  ;;  %v660_v30 = vpop.f32.mrf.mxu1  ;;  %v673_v31 = vadd.f32 %v672_v25, %v659_v29 }
  0xb7   :  { %v661_v34 = vadd.f32 %v660_v30, %v646_v28 }
  0xb8   :  { %v687_v36 = vadd.f32 %v686_v26, %v673_v31 }
  0xbd   :  { %v674_v32 = vpop.f32.mrf.mxu2 }
  0xbe   :  { %v688_v33 = vpop.f32.mrf.mxu3  ;;  %v675_v38 = vadd.f32 %v674_v32, %v661_v34 }
  0xc0   :  { %v689_v42 = vadd.f32 %v688_v33, %v675_v38 }
  0xcd   :  { %v700_v35 = vpop.f32.mrf.mxu0 }
  0xce   :  { %v714_v37 = vpop.f32.mrf.mxu1  ;;  %v701_v39 = vadd.f32 %v700_v35, %v687_v36 }
  0xd0   :  { %v715_v43 = vadd.f32 %v714_v37, %v701_v39 }
  0xd5   :  { %v728_v40 = vpop.f32.mrf.mxu2  ;;  %v702_v44 = vpop.f32.mrf.mxu0 }
  0xd6   :  { %v742_v41 = vpop.f32.mrf.mxu3  ;;  %v729_v45 = vadd.f32 %v728_v40, %v715_v43  ;;  %v703_v46 = vadd.f32 %v702_v44, %v689_v42  ;;  %v716_v47 = vpop.f32.mrf.mxu1 }
  0xd8   :  { %v743_v48 = vadd.f32 %v742_v41, %v729_v45  ;;  %v717_v50 = vadd.f32 %v716_v47, %v703_v46 }
  0xda   :  { %v760_v54 = vadd.f32 %v1239_v49, %v743_v48 }
  0xdc   :  { %v762_v57 = vmax.f32 %v760_v54, 0.0 }
  0xdd   :  { %v730_v51 = vpop.f32.mrf.mxu2 }
  0xde   :  { %v731_v52 = vadd.f32 %v730_v51, %v717_v50  ;;  %v744_v53 = vpop.f32.mrf.mxu3 }
  0xe0   :  { %v745_v55 = vadd.f32 %v744_v53, %v731_v52 }
  0xe2   :  { %v761_v56 = vadd.f32 %v1239_v49, %v745_v55 }
  0xe4   :  { %v763_v58 = vmax.f32 %v761_v56, 0.0 }
  0xe6   :  { %v764_v59 = vpack.c.bf16 %v763_v58, %v762_v57 }
  0xe8   :  { %841 = vmatmul.bf16.vlgmr.msra.gmra.mxu0 %v764_v59 }
 0x165   :  { %v842_v61 = vpop.f32.mrf.mxu0 }
 0x166   :  { %v843_v62 = vadd.f32 %v1240_v60, %v842_v61 }
 0x168   :  { %847 = vst [vmem:[#allocation9] sm:$0xff] %v843_v62 }
 0x16d   :  { %v844_v63 = vpop.f32.mrf.mxu0 }
 0x16e   :  { %v845_v0 = vadd.f32 %v1240_v60, %v844_v63 }
 0x170   :  { %848 = vst [vmem:[#allocation9 + $0x8] sm:$0xff] %v845_v0 }
 0x171   :  { %852 = vsyncadd [#allocation5], 224  ;;  %s855_s14 = sshll.u32 %s1406_s5, 4  ;;  %s1350_s15 = smov [#allocation9]   ;;  %s856_s14 = int_to_ptr.hbm [resolvable:$true] %s855_s14 }
 0x172   :  { %s853_s16 = sshll.u32 %s1350_s15, 4  ;;  %s1351_s17 = smov 32   ;;  %s854_s16 = int_to_ptr.vmem [resolvable:$true] %s853_s16 }
 0x173   :  { %s1352_s18 = smov 2  }
 0x174   :  { %861 = dma.vmem_to_hbm [thread:$0]  %s854_s16, 32, %s856_s14, [#allocation5], %s1351_s17, %s1351_s17, %s1352_s18  }
 0x175   :  { %1341 = dma.done.wait [#allocation5], 256  }
 0x176   :  { %1342 = vsyncadd [#allocation5], 4294967040 }
 0x177   :  { %866 = vsyncpa [#allocation4], 1 }
 0x178   :  { %867 = vsyncpa [#allocation7], 1 }
 0x179   :  { %868 = vsyncpa [#allocation5], 1 }

</bundles_post_ra>
